<compile_context>
chip_gen: v6e
topology: v6e:2x2x1
jax: 0.10.0
libtpu: 0.0.40
codegen_flags: <defaults>
</compile_context>

<pallas_src>
import jax
import jax.numpy as jnp
from jax.experimental import pallas as pl
from jax.experimental.pallas import tpu as pltpu


# ----------------------------------------------------------------------------- kernel


def _qnet_fwd_kernel(x_ref, w1_ref, b1_ref, out_ref):
    """out = relu(x @ W1 + b1) for one batch tile.

    x_ref  : (TB, In)  x-dtype (f32 or bf16)
    w1_ref : (In, H)   pre-transposed at prep time -> canonical MXU (M,K)x(K,N)
    b1_ref : (1,  H)   f32
    out_ref: (TB, H)   x-dtype (unpadded; H == full array dim, masked vst is fine)
    """
    h = jnp.dot(x_ref[...], w1_ref[...], preferred_element_type=jnp.float32)
    # Epilogue (bias add + relu) in f32: accumulator is already f32 and v5e has no
    # bf16 VPU; cast once on the way out.
    out_ref[...] = jnp.maximum(h + b1_ref[...], 0.0).astype(out_ref.dtype)


# --------------------------------------------------------------------------- wrappers


def _round_up(n, m):
    return ((n + m - 1) // m) * m


def prepare_qnet_params(w1, b1, dtype=jnp.float32):
    """One-time (outside the hot path) parameter prep.

    Transposes the PyTorch (H, In) weight to (In, H) once so the kernel never
    re-lays-out the VMEM-resident weight. No hidden-dim padding (the kernel emits
    the unpadded output directly). Bias stays f32 (tiny; epilogue math is f32).
    Returns (w1_t (In, H), b1_r (1, H)).
    """
    w1_t = jnp.asarray(w1).astype(dtype).T                    # (In, H)
    b1_r = jnp.asarray(b1).astype(jnp.float32).reshape(1, -1)  # (1, H)
    return w1_t, b1_r


_MAX_TB = 4096  # rows per grid step; x+out per step stays a few MiB even double-buffered


def _pick_batch_tile(B):
    """Batch-tile (sublane) size.

    - Tiny B: one grid step (block == full batch dim is always legal).
    - Otherwise: an EVEN number of >=2 grid steps (so v7x's 2nd TensorCore gets work
      under dimension_semantics=("parallel",)), with tiles a multiple of 8 sublanes
      and capped at _MAX_TB to amortize the ~0.35 us fixed per-step overhead.
    """
    if B <= 8:
        return B
    n_steps = max(2, 2 * (-(-B // (2 * _MAX_TB))))  # even, >= 2
    tb = _round_up(-(-B // n_steps), 8)
    return min(tb, _MAX_TB)


def linear_qnet_forward(x, w1_t, b1_r, *, batch_tile=None):
    """x: (B, In); w1_t: (In, H) (pre-transposed); b1_r: (1, H) f32.

    Returns relu(x @ W1^T + b1) with shape (B, H), dtype of x.
    """
    B, In = x.shape
    In_w, H = w1_t.shape
    assert In_w == In, f"weight In={In_w} does not match x In={In}"
    tb = batch_tile if batch_tile is not None else _pick_batch_tile(B)
    grid = (pl.cdiv(B, tb),)

    itemsize = jnp.dtype(x.dtype).itemsize
    cost = pl.CostEstimate(
        flops=2 * B * In * H,
        transcendentals=0,
        bytes_accessed=(B * In + B * H) * itemsize + (In * H) * w1_t.dtype.itemsize + H * 4,
    )

    # NOTE: a trailing partial batch tile (B % tb != 0) feeds undefined padded rows
    # through the matmul, but those output rows are never written back — benign, do
    # NOT add a mask for it.
    return pl.pallas_call(
        _qnet_fwd_kernel,
        out_shape=jax.ShapeDtypeStruct((B, H), x.dtype),
        grid=grid,
        in_specs=[
            # x: tiled over the batch axis; In left unpadded (full contiguous rows).
            pl.BlockSpec((tb, In), lambda i: (i, 0)),
            # W1 / b1: same block every grid step -> stay resident in VMEM.
            pl.BlockSpec((In, H), lambda i: (0, 0)),
            pl.BlockSpec((1, H), lambda i: (0, 0)),
        ],
        out_specs=pl.BlockSpec((tb, H), lambda i: (i, 0)),
        compiler_params=pltpu.CompilerParams(
            # Batch axis is independent -> shard grid steps across TensorCores on v7x.
            dimension_semantics=("parallel",),
        ),
        cost_estimate=cost,
    )(x, w1_t, b1_r)


# ------------------------------------------------------------------------ test driver


def _torch_linear_init(key, out_features, in_features):
    """Deterministic init mimicking torch.nn.Linear (uniform +/- 1/sqrt(fan_in))."""
    kw, kb = jax.random.split(key)
    bound = 1.0 / jnp.sqrt(jnp.float32(in_features))
    w = jax.random.uniform(kw, (out_features, in_features), jnp.float32, -bound, bound)
    b = jax.random.uniform(kb, (out_features,), jnp.float32, -bound, bound)
    return w, b


def _reference_forward(x, w1, b1):
    # Pure-JAX reference for the tensor compute: relu(linear1(x)).
    return jnp.maximum(x @ w1.T + b1, 0.0)


if __name__ == "__main__":
    key = jax.random.PRNGKey(0)
    k_x, k_l1, k_l2, k_x2 = jax.random.split(key, 4)

    batch = 2
    input_size = 16
    hidden_size = 32

    # Parameters. linear2 is initialized for shape-fidelity with __init__, but the
    # reference forward never applies it to a tensor (it returns the module object).
    w1, b1 = _torch_linear_init(k_l1, hidden_size, input_size)
    w2, b2 = _torch_linear_init(k_l2, hidden_size, input_size)  # unused by forward

    # One-time parameter preparation (transpose; outside the per-call hot path).
    w1_t, b1_r = prepare_qnet_params(w1, b1)

    # Small-batch path (single grid step).
    x = jax.random.normal(k_x, (batch, input_size), jnp.float32)
    out = jax.block_until_ready(linear_qnet_forward(x, w1_t, b1_r))
    ref = _reference_forward(x, w1, b1)
    assert out.shape == (batch, hidden_size)
    assert jnp.allclose(out, ref, atol=1e-5, rtol=1e-5)

    # Multi-step path (exercises batch tiling + the trailing partial tile).
    x2 = jax.random.normal(k_x2, (50, input_size), jnp.float32)
    out2 = jax.block_until_ready(linear_qnet_forward(x2, w1_t, b1_r))
    ref2 = _reference_forward(x2, w1, b1)
    assert out2.shape == (50, hidden_size)
    assert jnp.allclose(out2, ref2, atol=1e-5, rtol=1e-5)

    print("KERNEL_OK")
</pallas_src>

<mosaic_0001>
module attributes {stable_mosaic.version = 11 : i64} {
  func.func @_qnet_fwd_kernel(%arg0: i32, %arg1: memref<2x16xf32, #tpu.memory_space<vmem>>, %arg2: memref<16x32xf32, #tpu.memory_space<vmem>>, %arg3: memref<1x32xf32, #tpu.memory_space<vmem>>, %arg4: memref<2x32xf32, #tpu.memory_space<vmem>>) attributes {dimension_semantics = [#tpu.dimension_semantics<parallel>], iteration_bounds = array<i64: 1>, scalar_prefetch = 0 : i64, scratch_operands = 0 : i64, tpu.core_type = #tpu.core_type<tc>, window_params = [{transform_indices = @transform_0, window_bounds = array<i64: 2, 16>}, {pipeline_mode = #tpu.pipeline_mode<synchronous>, transform_indices = @transform_1, window_bounds = array<i64: 16, 32>}, {pipeline_mode = #tpu.pipeline_mode<synchronous>, transform_indices = @transform_2, window_bounds = array<i64: 1, 32>}, {transform_indices = @transform_3, window_bounds = array<i64: 2, 32>}]} {
    %c0 = arith.constant 0 : index
    %c0_0 = arith.constant 0 : index
    %0 = vector.load %arg1[%c0, %c0_0] : memref<2x16xf32, #tpu.memory_space<vmem>>, vector<2x16xf32>
    %c0_1 = arith.constant 0 : index
    %c0_2 = arith.constant 0 : index
    %1 = vector.load %arg2[%c0_1, %c0_2] : memref<16x32xf32, #tpu.memory_space<vmem>>, vector<16x32xf32>
    %cst = arith.constant dense<0.000000e+00> : vector<2x32xf32>
    %2 = tpu.matmul %0, %1, %cst {dimension_numbers = #tpu.dot_dimension_numbers<[1], [0], [0], [1], [0, 0, 1, 1], [], []>} : vector<2x16xf32>, vector<16x32xf32>, vector<2x32xf32> -> vector<2x32xf32>
    %c0_3 = arith.constant 0 : index
    %c0_4 = arith.constant 0 : index
    %3 = vector.load %arg3[%c0_3, %c0_4] : memref<1x32xf32, #tpu.memory_space<vmem>>, vector<1x32xf32>
    %4 = vector.broadcast %3 : vector<1x32xf32> to vector<2x32xf32>
    %5 = arith.addf %2, %4 : vector<2x32xf32>
    %cst_5 = arith.constant 0.000000e+00 : f32
    %6 = vector.broadcast %cst_5 : f32 to vector<2x32xf32>
    %7 = arith.maximumf %5, %6 : vector<2x32xf32>
    %c0_6 = arith.constant 0 : index
    %c0_7 = arith.constant 0 : index
    %8 = vector.load %arg4[%c0_6, %c0_7] : memref<2x32xf32, #tpu.memory_space<vmem>>, vector<2x32xf32>
    tpu.vector_store %arg4[%c0_6, %c0_7], %7 {strides = array<i32>} : memref<2x32xf32, #tpu.memory_space<vmem>>, vector<2x32xf32>,
    return
  }
  func.func @transform_0(%arg0: i32) -> (i32, i32) {
    %c0_i32 = arith.constant 0 : i32
    %c0_i32_0 = arith.constant 0 : i32
    return %arg0, %c0_i32 : i32, i32
  }
  func.func @transform_1(%arg0: i32) -> (i32, i32) {
    %c0_i32 = arith.constant 0 : i32
    %c0_i32_0 = arith.constant 0 : i32
    %c0_i32_1 = arith.constant 0 : i32
    return %c0_i32, %c0_i32_0 : i32, i32
  }
  func.func @transform_2(%arg0: i32) -> (i32, i32) {
    %c0_i32 = arith.constant 0 : i32
    %c0_i32_0 = arith.constant 0 : i32
    %c0_i32_1 = arith.constant 0 : i32
    return %c0_i32, %c0_i32_0 : i32, i32
  }
  func.func @transform_3(%arg0: i32) -> (i32, i32) {
    %c0_i32 = arith.constant 0 : i32
    %c0_i32_0 = arith.constant 0 : i32
    return %arg0, %c0_i32 : i32, i32
  }
}

</mosaic_0001>

<bundles_post_ra>
// kernel: tpu_custom_call.1
= control target key start
LH: loop header
LB: loop body
LE: loop exit
PB: predicated region body
PF: predicated region fallthrough
CT: control target
= control target key end

     0   :  { %8 = vsyncpa [#allocation3], 0  ;;  %s268_s0 = inlined_call_operand.hbm [shape: f32[2,16], index: 0, kind: input, shape index: {}]   ;;  %s269_s1 = inlined_call_operand.hbm [shape: f32[16,32], index: 1, kind: input, shape index: {}]   ;;  %s270_s2 = inlined_call_operand.vmem [shape: f32[1,32], index: 2, kind: input, shape index: {}]   ;;  %s271_s3 = inlined_call_operand.hbm [shape: f32[2,32], index: 3, kind: output, shape index: {}]  }
   0x1   :  { %9 = vsyncpa [#allocation6], 0 }
   0x2   :  { %10 = vsyncpa [#allocation4], 0  ;;  %s229_s12 = smov [#allocation2]   ;;  %s230_s14 = smov [#allocation5]  }
   0x3   :  { %s17_s13 = sshll.u32 %s229_s12, 4  ;;  %s26_s15 = sshll.u32 %s230_s14, 4  ;;  %s18_s13 = int_to_ptr.vmem [resolvable:$true] %s17_s13  ;;  %s27_s15 = int_to_ptr.vmem [resolvable:$true] %s26_s15 }
   0x4   :  { %s171_s16 = scalar_lea.vmem %s18_s13, 32  ;;  %p176_p1 = scmp.lt.s32.totalorder %s18_s13, %s18_s13 }
   0x5   :  { %p172_p0 = scmp.ne.s32.totalorder %s18_s13, %s171_s16  ;;  %p177_p2 = scmp.lt.s32.totalorder %s171_s16, %s171_s16 }
   0x7   :  { %p178_p3 = por %p177_p2, %p176_p1 }
   0x9   :  { %p179_p4 = pnand %p178_p3, %p172_p0 }
   0xb   :  { %182 = shalt.err (!%p179_p4)
}
   0xc   :  { %20 = dma.hbm_to_vmem [thread:$0]  %s268_s0, 32, %s18_s13, [#allocation3]  }
   0xd   :  { %s191_s19 = scalar_lea.vmem %s27_s15, 256  ;;  %p196_p6 = scmp.lt.s32.totalorder %s27_s15, %s27_s15 }
   0xe   :  { %p192_p5 = scmp.ne.s32.totalorder %s27_s15, %s191_s19  ;;  %p197_p7 = scmp.lt.s32.totalorder %s191_s19, %s191_s19 }
  0x10   :  { %p198_p8 = por %p197_p7, %p196_p6 }
  0x12   :  { %p199_p9 = pnand %p198_p8, %p192_p5 }
  0x14   :  { %202 = shalt.err (!%p199_p9)
}
  0x15   :  { %s231_s20 = smov 128   ;;  %s232_s21 = smov 8  }
  0x16   :  { %32 = dma.hbm_to_vmem [thread:$0]  %s269_s1, 256, %s27_s15, [#allocation6], %s231_s20, %s231_s20, %s232_s21  }
  0x17   :  { %223 = dma.done.wait [#allocation3], 32  }
  0x18   :  { %224 = vsyncadd [#allocation3], 4294967264 }
  0x19   :  { %225 = dma.done.wait [#allocation6], 256  }
  0x1a   :  { %226 = vsyncadd [#allocation6], 4294967040  ;;  %v233_v0 = vmov 0.0   ;;  %vm234_vm0 = vmmov 0   ;;  %v43_v1 = vld [vmem:[#allocation5 + $0x8] sm:$0xff]  ;;  %v42_v2 = vld [vmem:[#allocation5] sm:$0xff] }
  0x1b   :  { %149 = vmatprep.subr.mxu0 %v233_v0  ;;  %153 = vmatprep.mubr.msk.f32.mxu0 %vm234_vm0, %v233_v0  ;;  %v41_v3 = vld [vmem:[#allocation2] sm:$0x3]  ;;  %vm51_vm1 = vcmask 130048   ;;  %s235_s1 = smov [#allocation7]   ;;  %vm126_vm2 = vcmask 254976  }
  0x1c   :  { %150 = vmatpush3.msra.mxu0 %v43_v1  ;;  %v144_v4 = vld [vmem:[%s270_s2] ss:$0 sm:$0xff]  ;;  %s134_s25 = sshll.u32 %s235_s1, 4  ;;  %s135_s25 = int_to_ptr.vmem [resolvable:$true] %s134_s25 }
  0x1d   :  { %151 = vmatprep.subr.mxu0 %v233_v0  ;;  %s203_s26 = scalar_lea.vmem %s135_s25, 32  ;;  %p208_p11 = scmp.lt.s32.totalorder %s135_s25, %s135_s25 }
  0x1e   :  { %152 = vmatpush3.msra.mxu0 %v42_v2  ;;  %p204_p10 = scmp.ne.s32.totalorder %s135_s25, %s203_s26  ;;  %p209_p12 = scmp.lt.s32.totalorder %s203_s26, %s203_s26 }
  0x1f   :  { %154 = vmatmul.mubr.msk.f32.vlgmr.msra.gmra.mxu0 %vm51_vm1, %v41_v3 }
  0x20   :  { %p210_p13 = por %p209_p12, %p208_p11 }
  0x22   :  { %p211_p0 = pnand %p210_p13, %p204_p10 }
  0xdf   :  { %v121_v5 = vpop.f32.mrf.mxu0 }
  0xe0   :  { %v122_v6 = vadd.f32 %v144_v4, %v121_v5 }
  0xe1   :  { %v155_v7 = vpop.f32.mrf.mxu0 }
  0xe2   :  { %v125_v8 = vmax.f32 %v122_v6, 0.0 }
  0xe4   :  { %127 = vst.msk [vmem:[#allocation7] sm:$0x3] %vm126_vm2, %v125_v8 }
  0xe5   :  { %214 = shalt.err (!%p211_p0)
}
  0xe6   :  { %137 = dma.vmem_to_hbm [thread:$0]  %s135_s25, 32, %s271_s3, [#allocation4]  }
  0xe7   :  { %227 = dma.done.wait [#allocation4], 32  }
  0xe8   :  { %228 = vsyncadd [#allocation4], 4294967264 }
  0xe9   :  { %141 = vsyncpa [#allocation3], 1 }
  0xea   :  { %142 = vsyncpa [#allocation6], 1 }
  0xeb   :  { %143 = vsyncpa [#allocation4], 1 }

</bundles_post_ra>
